<compile_context>
chip_gen: v6e
topology: v6e:2x2x1
jax: 0.10.0
libtpu: 0.0.40
codegen_flags: <defaults>
</compile_context>

<pallas_src>
from functools import partial

import jax
import jax.numpy as jnp
from jax.experimental import pallas as pl
from jax.experimental.pallas import tpu as pltpu


def _round_up(x: int, m: int) -> int:
    return ((x + m - 1) // m) * m


def _focal_kernel(p_ref, y_ref, out_ref, acc_ref, *,
                  hw, tile_s, alpha, gamma, suppress_bkg, mask_needed):
    t = pl.program_id(1)

    @pl.when(t == 0)
    def _():
        acc_ref[...] = jnp.zeros_like(acc_ref)

    p = p_ref[0].astype(jnp.float32)       # (C, TILE_S, 128); f32 upcast in-kernel
    y = y_ref[0].astype(jnp.int32)         # (TILE_S, 128) labels

    # Target-class probability: compare against a class iota on the cheap
    # leading (non sublane/lane) axis, then reduce with C vreg adds.
    cls = jax.lax.broadcasted_iota(jnp.int32, p.shape, 0)
    p_t = jnp.sum(jnp.where(cls == y[None], p, 0.0), axis=0)      # (TILE_S, 128)

    ce = -jnp.log(p_t + 1e-6)                                     # one log / pixel
    one_minus = 1.0 - p_t
    if gamma == 2.0:                       # common case: skip EUP pow
        mod = one_minus * one_minus
    elif gamma == 1.0:
        mod = one_minus
    elif gamma == 0.0:
        mod = jnp.ones_like(one_minus)
    else:
        mod = jnp.power(one_minus, jnp.float32(gamma))

    if suppress_bkg:
        loss = jnp.where(y == 0, (1.0 - alpha) * mod * ce, alpha * ce)
    else:
        loss = alpha * (mod * ce)

    if mask_needed:  # statically skipped when HW and S tile evenly
        sub = jax.lax.broadcasted_iota(jnp.int32, (tile_s, 128), 0)
        lane = jax.lax.broadcasted_iota(jnp.int32, (tile_s, 128), 1)
        pix = (t * tile_s + sub) * 128 + lane
        loss = jnp.where(pix < hw, loss, 0.0)

    acc_ref[...] += loss                   # vector accumulate, no per-step reduce

    @pl.when(t == pl.num_programs(1) - 1)
    def _():
        # Per-batch-element partial sums: reduce over sublanes only; lanes,
        # batch, and the /N happen in the tiny wrapper epilogue.
        out_ref[...] = jnp.sum(acc_ref[...], axis=0, keepdims=True)[None]


def categorical_focal_loss(y_pred, y_true, *, alpha=0.7, gamma=2.0,
                           suppress_bkg=False, target_tile_bytes=4 * 1024 * 1024):
    """y_pred: (D, C, H, W) probabilities, y_true: (D, H, W) int -> scalar f32."""
    d, c, h, w = y_pred.shape
    hw = h * w
    n = d * hw

    hw_pad = _round_up(hw, 128)
    s = hw_pad // 128

    # Labels lane-dense and narrow: int8 when the class count allows.
    lbl_dtype = jnp.int8 if c <= 127 else jnp.int32
    p3 = y_pred.reshape(d, c, hw)                     # free reshape, no transpose
    y3 = y_true.astype(lbl_dtype).reshape(d, hw)
    if hw_pad != hw:
        p3 = jnp.pad(p3, ((0, 0), (0, 0), (0, hw_pad - hw)))
        y3 = jnp.pad(y3, ((0, 0), (0, hw_pad - hw)))
    p4 = p3.reshape(d, c, s, 128)
    y4 = y3.reshape(d, s, 128)

    # Tile sizing: ~target_tile_bytes of probabilities per grid step, with an
    # honest (lane-dense, double-buffered, + accumulator) VMEM accounting.
    itemsize = int(jnp.dtype(y_pred.dtype).itemsize)
    lbl_itemsize = int(jnp.dtype(lbl_dtype).itemsize)
    vmem_cap = 24 * 1024 * 1024                       # kernel working-set budget
    bytes_per_row = 128 * (2 * c * itemsize + 2 * lbl_itemsize + 4)
    tile_s = max(8, int(target_tile_bytes) // (c * 128 * itemsize))
    tile_s = max(8, min(tile_s, vmem_cap // bytes_per_row))
    if tile_s >= s:
        tile_s = s                                    # full dim: always legal
    else:
        tile_s = max(8, (tile_s // 32) * 32)          # f32 sublane / int8 packing
    n_t = -(-s // tile_s)
    mask_needed = (hw_pad != hw) or (s % tile_s != 0)

    kernel = partial(_focal_kernel, hw=hw, tile_s=tile_s, alpha=float(alpha),
                     gamma=float(gamma), suppress_bkg=bool(suppress_bkg),
                     mask_needed=bool(mask_needed))

    partials = pl.pallas_call(
        kernel,
        out_shape=jax.ShapeDtypeStruct((d, 1, 128), jnp.float32),
        grid=(d, n_t),
        in_specs=[
            pl.BlockSpec((1, c, tile_s, 128), lambda b, t: (b, 0, t, 0)),  # probs
            pl.BlockSpec((1, tile_s, 128), lambda b, t: (b, t, 0)),        # labels
        ],
        out_specs=pl.BlockSpec((1, 1, 128), lambda b, t: (b, 0, 0)),
        scratch_shapes=[pltpu.VMEM((tile_s, 128), jnp.float32)],
        compiler_params=pltpu.CompilerParams(
            dimension_semantics=("parallel", "arbitrary"),
            vmem_limit_bytes=48 * 1024 * 1024,
        ),
    )(p4, y4)

    return jnp.sum(partials) / jnp.float32(n)


def _reference(y_pred, y_true, alpha, gamma, suppress_bkg):
    """Pure-JAX transcription of the PyTorch module's forward."""
    c = y_pred.shape[1]
    onehot = jax.nn.one_hot(y_true, c, dtype=jnp.float32).transpose(0, 3, 1, 2)
    ce = -onehot * jnp.log(y_pred + 1e-6)
    if suppress_bkg:
        bkg_probs = y_pred[:, 0]
        bkg_loss = (1.0 - alpha) * (1.0 - bkg_probs) ** gamma * ce[:, 0]
        fg_loss = alpha * ce[:, 1:]
        fl = jnp.concatenate([bkg_loss[:, None], fg_loss], axis=1)
    else:
        fl = alpha * ((1.0 - y_pred) ** gamma) * ce
    return jnp.mean(jnp.sum(fl, axis=1))


if __name__ == "__main__":
    key = jax.random.PRNGKey(0)
    k1, k2 = jax.random.split(key)

    # Aligned case: HW = 256 is a multiple of 128 -> no padding, no masking.
    D, C, H, W = 2, 4, 16, 16
    logits = jax.random.normal(k1, (D, C, H, W), dtype=jnp.float32)
    y_pred = jax.nn.softmax(logits, axis=1)          # module consumes probabilities
    y_true = jax.random.randint(k2, (D, H, W), 0, C, dtype=jnp.int32)

    loss = categorical_focal_loss(y_pred, y_true, alpha=0.7, gamma=2.0,
                                  suppress_bkg=False)
    loss = jax.block_until_ready(loss)
    ref = _reference(y_pred, y_true, 0.7, 2.0, False)
    assert jnp.allclose(loss, ref, rtol=1e-4, atol=1e-6), (loss, ref)

    # suppress_bkg path.
    loss_sb = categorical_focal_loss(y_pred, y_true, alpha=0.7, gamma=2.0,
                                     suppress_bkg=True)
    loss_sb = jax.block_until_ready(loss_sb)
    ref_sb = _reference(y_pred, y_true, 0.7, 2.0, True)
    assert jnp.allclose(loss_sb, ref_sb, rtol=1e-4, atol=1e-6), (loss_sb, ref_sb)

    # Ragged case: HW = 1760 (not a multiple of 128) with a tiny tile target so
    # the multi-step grid, accumulator carry and tail masking are all exercised.
    D2, C2, H2, W2 = 2, 3, 40, 44
    logits2 = jax.random.normal(k1, (D2, C2, H2, W2), dtype=jnp.float32)
    y_pred2 = jax.nn.softmax(logits2, axis=1)
    y_true2 = jax.random.randint(k2, (D2, H2, W2), 0, C2, dtype=jnp.int32)
    loss2 = jax.block_until_ready(
        categorical_focal_loss(y_pred2, y_true2, alpha=0.7, gamma=2.0,
                               suppress_bkg=False, target_tile_bytes=8 * 1024))
    ref2 = _reference(y_pred2, y_true2, 0.7, 2.0, False)
    assert jnp.allclose(loss2, ref2, rtol=1e-4, atol=1e-6), (loss2, ref2)

    print("KERNEL_OK")
</pallas_src>

<mosaic_0001>
module attributes {stable_mosaic.version = 11 : i64} {
  func.func @_focal_kernel(%arg0: i32, %arg1: i32, %arg2: memref<1x4x2x128xf32, #tpu.memory_space<vmem>>, %arg3: memref<1x2x128xi8, #tpu.memory_space<vmem>>, %arg4: memref<1x1x128xf32, #tpu.memory_space<vmem>>, %arg5: memref<2x128xf32, #tpu.memory_space<vmem>>) attributes {dimension_semantics = [#tpu.dimension_semantics<parallel>, #tpu.dimension_semantics<arbitrary>], iteration_bounds = array<i64: 2, 1>, scalar_prefetch = 0 : i64, scratch_operands = 1 : i64, tpu.core_type = #tpu.core_type<tc>, window_params = [{transform_indices = @transform_0, window_bounds = array<i64: 1, 4, 2, 128>}, {transform_indices = @transform_1, window_bounds = array<i64: 1, 2, 128>}, {transform_indices = @transform_2, window_bounds = array<i64: 1, 1, 128>}]} {
    %c0_i32 = arith.constant 0 : i32
    %0 = arith.cmpi eq, %arg1, %c0_i32 : i32
    %1 = arith.extui %0 : i1 to i32
    %c0_i32_0 = arith.constant 0 : i32
    %2 = arith.cmpi ne, %1, %c0_i32_0 : i32
    scf.if %2 {
      %cst_18 = arith.constant 0.000000e+00 : f32
      %32 = vector.broadcast %cst_18 : f32 to vector<2x128xf32>
      %c0_19 = arith.constant 0 : index
      %c0_20 = arith.constant 0 : index
      %33 = vector.load %arg5[%c0_19, %c0_20] : memref<2x128xf32, #tpu.memory_space<vmem>>, vector<2x128xf32>
      tpu.vector_store %arg5[%c0_19, %c0_20], %32 {strides = array<i32>} : memref<2x128xf32, #tpu.memory_space<vmem>>, vector<2x128xf32>,
    } else {
    }
    %c0 = arith.constant 0 : index
    %c0_1 = arith.constant 0 : index
    %c0_2 = arith.constant 0 : index
    %c0_3 = arith.constant 0 : index
    %3 = vector.load %arg2[%c0, %c0_1, %c0_2, %c0_3] : memref<1x4x2x128xf32, #tpu.memory_space<vmem>>, vector<1x4x2x128xf32>
    %4 = vector.shape_cast %3 : vector<1x4x2x128xf32> to vector<4x2x128xf32>
    %c0_4 = arith.constant 0 : index
    %c0_5 = arith.constant 0 : index
    %c0_6 = arith.constant 0 : index
    %5 = vector.load %arg3[%c0_4, %c0_5, %c0_6] : memref<1x2x128xi8, #tpu.memory_space<vmem>>, vector<1x2x128xi8>
    %6 = vector.shape_cast %5 : vector<1x2x128xi8> to vector<2x128xi8>
    %7 = arith.extsi %6 : vector<2x128xi8> to vector<2x128xi32>
    %8 = tpu.iota {dimensions = array<i32: 0>} : vector<4x2x128xi32>
    %9 = vector.shape_cast %7 : vector<2x128xi32> to vector<1x2x128xi32>
    %10 = vector.broadcast %9 : vector<1x2x128xi32> to vector<4x2x128xi32>
    %11 = arith.cmpi eq, %8, %10 : vector<4x2x128xi32>
    %cst = arith.constant 0.000000e+00 : f32
    %12 = vector.broadcast %cst : f32 to vector<4x2x128xf32>
    %13 = arith.select %11, %4, %12 : vector<4x2x128xi1>, vector<4x2x128xf32>
    %cst_7 = arith.constant dense<0.000000e+00> : vector<2x128xf32>
    %14 = vector.multi_reduction <add>, %13, %cst_7 [0] : vector<4x2x128xf32> to vector<2x128xf32>
    %cst_8 = arith.constant 9.99999997E-7 : f32
    %15 = vector.broadcast %cst_8 : f32 to vector<2x128xf32>
    %16 = arith.addf %14, %15 : vector<2x128xf32>
    %17 = math.log %16 : vector<2x128xf32>
    %cst_9 = arith.constant 0.000000e+00 : f32
    %18 = vector.broadcast %cst_9 : f32 to vector<2x128xf32>
    %19 = arith.subf %18, %17 : vector<2x128xf32>
    %cst_10 = arith.constant 1.000000e+00 : f32
    %20 = vector.broadcast %cst_10 : f32 to vector<2x128xf32>
    %21 = arith.subf %20, %14 : vector<2x128xf32>
    %22 = arith.mulf %21, %21 : vector<2x128xf32>
    %23 = arith.mulf %22, %19 : vector<2x128xf32>
    %cst_11 = arith.constant 0.699999988 : f32
    %24 = vector.broadcast %cst_11 : f32 to vector<2x128xf32>
    %25 = arith.mulf %24, %23 : vector<2x128xf32>
    %c0_12 = arith.constant 0 : index
    %c0_13 = arith.constant 0 : index
    %26 = vector.load %arg5[%c0_12, %c0_13] : memref<2x128xf32, #tpu.memory_space<vmem>>, vector<2x128xf32>
    %27 = arith.addf %26, %25 : vector<2x128xf32>
    %c0_14 = arith.constant 0 : index
    %c0_15 = arith.constant 0 : index
    %28 = vector.load %arg5[%c0_14, %c0_15] : memref<2x128xf32, #tpu.memory_space<vmem>>, vector<2x128xf32>
    tpu.vector_store %arg5[%c0_14, %c0_15], %27 {strides = array<i32>} : memref<2x128xf32, #tpu.memory_space<vmem>>, vector<2x128xf32>,
    %c0_i32_16 = arith.constant 0 : i32
    %29 = arith.cmpi eq, %arg1, %c0_i32_16 : i32
    %30 = arith.extui %29 : i1 to i32
    %c0_i32_17 = arith.constant 0 : i32
    %31 = arith.cmpi ne, %30, %c0_i32_17 : i32
    scf.if %31 {
      %c0_18 = arith.constant 0 : index
      %c0_19 = arith.constant 0 : index
      %32 = vector.load %arg5[%c0_18, %c0_19] : memref<2x128xf32, #tpu.memory_space<vmem>>, vector<2x128xf32>
      %cst_20 = arith.constant dense<0.000000e+00> : vector<128xf32>
      %33 = vector.multi_reduction <add>, %32, %cst_20 [0] : vector<2x128xf32> to vector<128xf32>
      %34 = vector.shape_cast %33 : vector<128xf32> to vector<1x128xf32>
      %35 = vector.shape_cast %34 : vector<1x128xf32> to vector<1x1x128xf32>
      %c0_21 = arith.constant 0 : index
      %c0_22 = arith.constant 0 : index
      %c0_23 = arith.constant 0 : index
      %36 = vector.load %arg4[%c0_21, %c0_22, %c0_23] : memref<1x1x128xf32, #tpu.memory_space<vmem>>, vector<1x1x128xf32>
      tpu.vector_store %arg4[%c0_21, %c0_22, %c0_23], %35 {strides = array<i32>} : memref<1x1x128xf32, #tpu.memory_space<vmem>>, vector<1x1x128xf32>,
    } else {
    }
    return
  }
  func.func @transform_0(%arg0: i32, %arg1: i32) -> (i32, i32, i32, i32) {
    %c0_i32 = arith.constant 0 : i32
    %c0_i32_0 = arith.constant 0 : i32
    %c0_i32_1 = arith.constant 0 : i32
    return %arg0, %c0_i32, %arg1, %c0_i32_0 : i32, i32, i32, i32
  }
  func.func @transform_1(%arg0: i32, %arg1: i32) -> (i32, i32, i32) {
    %c0_i32 = arith.constant 0 : i32
    %c0_i32_0 = arith.constant 0 : i32
    return %arg0, %arg1, %c0_i32 : i32, i32, i32
  }
  func.func @transform_2(%arg0: i32, %arg1: i32) -> (i32, i32, i32) {
    %c0_i32 = arith.constant 0 : i32
    %c0_i32_0 = arith.constant 0 : i32
    %c0_i32_1 = arith.constant 0 : i32
    return %arg0, %c0_i32, %c0_i32_0 : i32, i32, i32
  }
}

</mosaic_0001>

<bundles_post_ra>
// kernel: tpu_custom_call.1
= control target key start
LH: loop header
LB: loop body
LE: loop exit
PB: predicated region body
PF: predicated region fallthrough
CT: control target
= control target key end

     0   :  { %7 = vsyncpa [#allocation4], 0  ;;  %s790_s0 = inlined_call_operand.hbm [shape: f32[2,4,2,128], index: 0, kind: input, shape index: {}]   ;;  %s791_s1 = inlined_call_operand.hbm [shape: s8[2,2,128], index: 1, kind: input, shape index: {}]   ;;  %s792_s2 = inlined_call_operand.hbm [shape: f32[2,1,128], index: 2, kind: output, shape index: {}]  }
   0x1   :  { %9 = vsyncpa [#allocation4 + $0x1], 0 }
   0x2   :  { %10 = vsyncpa [#allocation7], 0 }
   0x3   :  { %12 = vsyncpa [#allocation7 + $0x1], 0 }
   0x4   :  { %13 = vsyncpa [#allocation5], 0 }
   0x5   :  { %15 = vsyncpa [#allocation5 + $0x1], 0  ;;  %s622_s9 = smov 0   ;;  %s624_s10 = smov 0  }
   0x6   :  { %s626_s11 = smov 0   ;;  %s628_s12 = smov 0  }
   0x7   :  { %s630_s13 = smov 0   ;;  %s632_s14 = smov 0  }
   0x8 LB: > { %s373_s15 = sadd.s32 4294967295, %s599_s14   ;;  %s374_s16 = sadd.s32 4294967294, %s599_s14   ;;  %s599_s14 = sphi %s632_s14, %s21_s14   ;;  %s595_s13 = sphi %s630_s13, %s804_s13   ;;  %s591_s12 = sphi %s628_s12, %s803_s12   ;;  %s587_s11 = sphi %s626_s11, %s802_s11   ;;  %s583_s10 = sphi %s624_s10, %s801_s10   ;;  %s579_s9 = sphi %s622_s9, %s800_s9  }
   0x9   : > { %s33_s17 = sadd.s32 1, %s595_s13  ;;  %s42_s18 = sadd.s32 1, %s587_s11 }
   0xa   : > { %p35_p0 = scmp.ge.s32.totalorder %s33_s17, 2  ;;  %p49_p1 = scmp.ne.s32.totalorder %s587_s11, %s583_s10 }
   0xb   : > { %p50_p2 = scmp.eq.s32.totalorder %s599_s14, 0  ;;  %p55_p3 = scmp.ne.s32.totalorder %s583_s10, %s579_s9 }
   0xc   : > { %s806_s17 = smov (%p35_p0, %s33_s17), 0  ;;  %p56_p5 = scmp.eq.s32.totalorder %s373_s15, 0 }
   0xd   : > { %p663_p4 = por %p50_p2, %p49_p1  ;;  %s37_s20 = ssub.s32 %s595_s13, %s806_s17 }
   0xe   : > { %p107_p6 = scmp.eq.s32.totalorder %s373_s15, 1  ;;  %p40_p7 = scmp.eq.s32.totalorder %s37_s20, 0 }
   0xf   : > { %p669_p8 = por %p56_p5, %p55_p3  ;;  %p113_p10 = scmp.eq.s32.totalorder %s374_s16, 1 }
  0x10   : > { %p673_p9 = por %p107_p6, %p49_p1  ;;  %p404_p13 = scmp.lt.s32.totalorder %s599_s14, 2 }
  0x11   : > { %s678_s23 = scalar_select %p40_p7, %s587_s11, %s42_s18  }
  0x12   : > { %p680_p11 = por %p113_p10, %p55_p3  ;;  %s687_s25 = sand.u32 1, %s587_s11  }
  0x13   : > { %s377_s26 = sshll.u32 %s687_s25, 3  ;;  %s386_s27 = sshll.u32 %s595_s13, 7 }
  0x14   : > { %s144_s30 = scalar_lea.hbm %s790_s0, %s386_s27  ;;  %s137_s3 = scalar_lea.vmem [#allocation3], %s377_s26 }
  0x15   : > { %s145_s4 = sshll.u32 %s137_s3, 4  ;;  %p696_p0 = pnand %p404_p13, %p663_p4  ;;  %s146_s4 = int_to_ptr.vmem [resolvable:$true] %s145_s4 }
  0x16   : > { %p381_p1 = scmp.ge.s32.totalorder %s599_s14, 1  ;;  %s134_s6 = scalar_lea.sflag [#allocation4], %s687_s25 }
  0x17   : > { %p461_p2 = pneg %p696_p0  ;;  %s472_s7 = scalar_lea.vmem %s146_s4, 128 }
  0x18   : > { %p473_p3 = scmp.ne.s32.totalorder %s146_s4, %s472_s7  ;;  %s601_s8 = smov [#allocation3]  }
  0x19   : > { %s477_s15 = sshll.u32 %s601_s8, 4  ;;  %s478_s15 = int_to_ptr.vmem [resolvable:$false] %s477_s15 }
  0x1a   : > { %p475_p5 = pnand %p473_p3, %p461_p2  ;;  %s479_s16 = scalar_lea.vmem %s478_s15, 256 }
  0x1b   : > { %p480_p4 = scmp.lt.s32.totalorder %s146_s4, %s478_s15  ;;  %p481_p7 = scmp.lt.s32.totalorder %s479_s16, %s472_s7 }
  0x1c   : > { %p476_p6 = pneg %p475_p5 }
  0x1d   : > { %p482_p10 = por %p481_p7, %p480_p4 }
  0x1f   : > { %p483_p13 = pnand %p482_p10, %p476_p6 }
  0x21   : > { %486 = shalt.err (!%p483_p13)
}
  0x22   : > { %s602_s18 = smov 32   ;;  %s603_s19 = smov 2  }
  0x23   : > { %396 = dma.hbm_to_vmem [thread:$0]  (!%p696_p0), %s144_s30, 128, %s146_s4, %s134_s6, %s602_s18, %s602_s18, %s603_s19  }
  0x24   : > { %p171_p3 = scmp.lt.s32.totalorder %s599_s14, 3  ;;  %s380_s20 = sshll.u32 %s595_s13, 4 }
  0x25   : > { %s164_s29 = scalar_lea.hbm %s791_s1, %s380_s20  ;;  %s158_s3 = scalar_lea.vmem [#allocation6], %s687_s25 }
  0x26   : > { %p713_p5 = pnand %p381_p1, %p171_p3  ;;  %s166_s7 = sshll.u32 %s158_s3, 4  ;;  %s167_s7 = int_to_ptr.vmem [resolvable:$true] %s166_s7 }
  0x27   : > { %s156_s8 = scalar_lea.sflag [#allocation7], %s687_s25  ;;  %s500_s15 = scalar_lea.vmem %s167_s7, 16 }
  0x28   : > { %p501_p6 = scmp.ne.s32.totalorder %s167_s7, %s500_s15  ;;  %s604_s30 = smov [#allocation6]  }
  0x29   : > { %s505_s4 = sshll.u32 %s604_s30, 4  ;;  %s506_s4 = int_to_ptr.vmem [resolvable:$false] %s505_s4 }
  0x2a   : > { %p503_p4 = pnand %p501_p6, %p461_p2  ;;  %s507_s6 = scalar_lea.vmem %s506_s4, 32 }
  0x2b   : > { %p508_p1 = scmp.lt.s32.totalorder %s167_s7, %s506_s4  ;;  %p509_p10 = scmp.lt.s32.totalorder %s507_s6, %s500_s15 }
  0x2c   : > { %p504_p7 = pneg %p503_p4 }
  0x2d   : > { %p510_p13 = por %p509_p10, %p508_p1 }
  0x2f   : > { %p511_p3 = pnand %p510_p13, %p504_p7 }
  0x31   : > { %514 = shalt.err (!%p511_p3)
}
  0x32   : > { %399 = dma.hbm_to_vmem [thread:$0]  (!%p696_p0), %s164_s29, 16, %s167_s7, %s156_s8  }
  0x33   : > { %175 = sbr.rel (%p713_p5) target bundleno = 131 (0x83), region = 28  ;;  %s730_s25 = sand.u32 (!%p713_p5), 1, %s583_s10  }
  0x34   : > { %s382_s16 = sshll.u32 (!%p713_p5), %s730_s25, 3  ;;  %s178_s18 = scalar_lea.sflag (!%p713_p5), [#allocation4], %s730_s25 }
  0x35   : > { %s181_s19 = scalar_lea.vmem (!%p713_p5), [#allocation3], %s382_s16 }
  0x38   : > { %566 = dma.done.wait (%p669_p8), %s178_s18, 128  }
  0x39   : > { %568 = vsyncadd (%p669_p8), %s178_s18, 4294967168  ;;  %s187_s5 = scalar_lea.sflag [#allocation7], %s730_s25  ;;  %s189_s20 = scalar_lea.vmem [#allocation6], %s730_s25 }
  0x3a   : > { %570 = dma.done.wait (%p669_p8), %s187_s5, 16  }
  0x3b   : > { %572 = vsyncadd (%p669_p8), %s187_s5, 4294967280  ;;  %v605_v0 = vmov 0.0   ;;  %v218_v1 = vld [vmem:[%s181_s19] sm:$0x3]  ;;  %v222_v2 = vld [vmem:[%s189_s20] sm:$0x1] }
  0x3c   : > { %217 = vst [vmem:[#allocation2] sm:$0x3] %v605_v0  ;;  %v219_v3 = vld [vmem:[%s181_s19 + $0x2] sm:$0x3]  ;;  %v220_v4 = vld [vmem:[%s181_s19 + $0x4] sm:$0x3]  ;;  %v223_v6 = vunpack.c.0.s8 %v222_v2 }
  0x3d   : > { %v221_v5 = vld [vmem:[%s181_s19 + $0x6] sm:$0x3]  ;;  %vm232_vm0 = vcmask 1041408   ;;  %s212_s21 = scalar_lea.vmem [#allocation8], %s730_s25  ;;  %s383_s27 = sshll.u32 %s591_s12, 4 }
  0x3e   : > { %vm224_vm1 = vcmp.eq.s32.totalorder %v223_v6, 0  ;;  %vm225_vm2 = vcmp.eq.s32.totalorder %v223_v6, 1  ;;  %vm226_vm3 = vcmp.eq.s32.totalorder %v223_v6, 2  ;;  %vm227_vm4 = vcmp.eq.s32.totalorder %v223_v6, 3  ;;  %s276_s26 = sshll.u32 %s212_s21, 4  ;;  %s274_s3 = scalar_lea.hbm %s792_s2, %s383_s27  ;;  %s277_s26 = int_to_ptr.vmem [resolvable:$true] %s276_s26 }
  0x3f   : > { %v228_v7 = vsel %vm224_vm1, %v218_v1, 0.0  ;;  %v229_v8 = vsel %vm225_vm2, %v219_v3, 0.0  ;;  %v230_v9 = vsel %vm226_vm3, %v220_v4, 0.0  ;;  %v231_v10 = vsel %vm227_vm4, %v221_v5, 0.0  ;;  %s264_s7 = scalar_lea.sflag [#allocation5], %s730_s25  ;;  %s515_s8 = scalar_lea.vmem %s277_s26, 16 }
  0x40   : > { %v233_v11 = vsel %vm232_vm0, %v228_v7, 0.0  ;;  %v234_v12 = vsel %vm232_vm0, %v229_v8, 0.0  ;;  %v236_v13 = vsel %vm232_vm0, %v230_v9, 0.0  ;;  %v238_v15 = vsel %vm232_vm0, %v231_v10, 0.0  ;;  %p516_p8 = scmp.ne.s32.totalorder %s277_s26, %s515_s8  ;;  %s606_s15 = smov [#allocation8]  }
  0x41   : > { %v235_v14 = vadd.f32 %v234_v12, %v233_v11  ;;  %s519_s30 = sshll.u32 %s606_s15, 4  ;;  %s520_s30 = int_to_ptr.vmem [resolvable:$false] %s519_s30 }
  0x42   : > { %p517_p0 = pnand %p516_p8, %p673_p9  ;;  %s521_s4 = scalar_lea.vmem %s520_s30, 32 }
  0x43   : > { %v237_v16 = vadd.f32 %v236_v13, %v235_v14  ;;  %v248_v25 = vld [vmem:[#allocation2] sm:$0x3]  ;;  %p522_p5 = scmp.lt.s32.totalorder %s277_s26, %s520_s30  ;;  %p523_p6 = scmp.lt.s32.totalorder %s521_s4, %s515_s8 }
  0x44   : > { %p518_p2 = pneg %p517_p0 }
  0x45   : > { %v239_v17 = vadd.f32 %v238_v15, %v237_v16  ;;  %p524_p4 = por %p523_p6, %p522_p5 }
  0x47   : > { %v240_v18 = vadd.f32 1e-06, %v239_v17  ;;  %v244_v19 = vsub.f32 1.0, %v239_v17  ;;  %p525_p7 = pnand %p524_p4, %p518_p2 }
  0x49   : > { %457 = vlog2.f32 %v240_v18  ;;  %v245_v22 = vmul.f32 %v244_v19, %v244_v19 }
  0x56   : > { %v458_v20 = vpop.eup %457 }
  0x57   : > { %v242_v21 = vmul.f32 0.6931472, %v458_v20 }
  0x59   : > { %v243_v23 = vsub.f32 0.0, %v242_v21 }
  0x5b   : > { %v246_v24 = vmul.f32 %v245_v22, %v243_v23 }
  0x5d   : > { %v247_v26 = vmul.f32 0.7, %v246_v24 }
  0x5f   : > { %v249_v27 = vadd.f32 %v248_v25, %v247_v26 }
  0x61   : > { %250 = vst [vmem:[#allocation2] sm:$0x3] %v249_v27 }
  0x68   : > { %v254_v28 = vld [vmem:[#allocation2] sm:$0x3] }
  0x69   : > { %v255_v29 = vsel %vm232_vm0, %v254_v28, 0.0 }
  0x6a   : > { %v256_v30 = vrot.slane %v255_v29, 4 }
  0x6c   : > { %v257_v31 = vadd.f32 %v256_v30, %v255_v29 }
  0x6e   : > { %v258_v32 = vrot.slane %v257_v31, 2 }
  0x70   : > { %v259_v33 = vadd.f32 %v258_v32, %v257_v31 }
  0x72   : > { %v260_v34 = vrot.slane %v259_v33, 1 }
  0x74   : > { %v261_v35 = vadd.f32 %v260_v34, %v259_v33 }
  0x76   : > { %262 = vst [vmem:[%s212_s21] sm:$0x1] %v261_v35 }
  0x77   : > { %528 = shalt.err (!%p525_p7)
}
  0x78   : > { %s529_s12 = scalar_lea.hbm %s274_s3, 16  ;;  %s533_s16 = scalar_lea.hbm %s792_s2, 32 }
  0x79   : > { %p530_p1 = scmp.ne.s32.totalorder %s274_s3, %s529_s12  ;;  %p534_p3 = scmp.lt.s32.totalorder %s274_s3, %s792_s2 }
  0x7a   : > { %p535_p8 = scmp.lt.s32.totalorder %s533_s16, %s529_s12 }
  0x7b   : > { %p531_p10 = pnand %p530_p1, %p673_p9 }
  0x7c   : > { %p536_p0 = por %p535_p8, %p534_p3 }
  0x7d   : > { %p532_p13 = pneg %p531_p10 }
  0x7f   : > { %p537_p12 = pnand %p536_p0, %p532_p13 }
  0x81   : > { %540 = shalt.err (!%p537_p12)
}
  0x82   : > { %391 = dma.vmem_to_hbm [thread:$0]  (%p673_p9), %s277_s26, 16, %s274_s3, %s264_s7  }
  0x83 PF: > { %s288_s5 = sand.u32 1, %s579_s9   ;;  %p799_p2 = scmp.ge.s32.totalorder %s599_s14, 2 }
  0x84   : > { %s289_s20 = scalar_lea.sflag [#allocation5], %s288_s5 }
  0x85   : > { %p401_p5 = pnand %p799_p2, %p680_p11 }
  0x87   : > { %p402_p6 = pneg %p401_p5 }
  0x89   : > { %574 = dma.done.wait (%p402_p6), %s289_s20, 16  }
  0x8a   : > { %576 = vsyncadd (%p402_p6), %s289_s20, 4294967280  ;;  %s21_s14 = sadd.s32 1, %s599_s14   ;;  %s800_s9 = smov %s583_s10 }
  0x8b   : > { %p18_p4 = scmp.ge.s32.totalorder %s21_s14, 4   ;;  %s801_s10 = smov %s587_s11 }
  0x8c   : > { %s802_s11 = smov %s678_s23  ;;  %s803_s12 = smov %s595_s13 }
  0x8d   : > { %s804_s13 = smov %s806_s17  ;;  %20 = sbr.rel (!%p18_p4) target bundleno = 8 (0x8), region = 94 }
  0x92   :  { %293 = vsyncpa [#allocation4], 1 }
  0x93   :  { %295 = vsyncpa [#allocation4 + $0x1], 1 }
  0x94   :  { %296 = vsyncpa [#allocation7], 1 }
  0x95   :  { %298 = vsyncpa [#allocation7 + $0x1], 1 }
  0x96   :  { %299 = vsyncpa [#allocation5], 1 }
  0x97   :  { %301 = vsyncpa [#allocation5 + $0x1], 1 }

</bundles_post_ra>
